<compile_context>
chip_gen: v5e
topology: v5e:2x2
jax: 0.10.0
libtpu: 0.0.40
codegen_flags: <defaults>
</compile_context>

<pallas_src>
import jax
import jax.numpy as jnp
from jax.experimental import pallas as pl
from jax.experimental.pallas import tpu as pltpu


def _center_loss_kernel(labels_ref,     # SMEM  (B_pad,) i32   scalar prefetch
                        x_ref,          # VMEM  (TB, D)        batch tile
                        centers_hbm,    # HBM   (C, D)         untiled (pl.ANY)
                        out_ref,        # VMEM  (TB, 1) f32    per-row distances
                        cbuf,           # VMEM  (TB, D)        gathered centers
                        sems):          # DMA semaphores (TB,)
    tb = x_ref.shape[0]
    base = pl.program_id(0) * tb

    # Gather the labeled center row for every row of this batch tile.
    copies = []
    for r in range(tb):                       # static unroll, tb is small
        lab = labels_ref[base + r]
        cp = pltpu.make_async_copy(
            centers_hbm.at[pl.ds(lab, 1)],    # (1, D) row of centers in HBM
            cbuf.at[pl.ds(r, 1)],             # (1, D) row of VMEM scratch
            sems.at[r],
        )
        cp.start()
        copies.append(cp)
    for cp in copies:
        cp.wait()

    # Elementwise math in f32 regardless of the storage dtype.
    x = x_ref[...].astype(jnp.float32)
    c = cbuf[...].astype(jnp.float32)
    diff = x - c
    dist = jnp.sum(diff * diff, axis=1, keepdims=True)        # (TB, 1)
    out_ref[...] = jnp.clip(dist, 1e-12, 1e12)


def center_loss(x, centers, labels, *, block_b=8):
    """CenterLoss forward.  x: (B, D), centers: (C, D), labels: (B,) int."""
    B, D = x.shape
    C, Dc = centers.shape
    assert D == Dc

    tb = block_b
    b_pad = pl.cdiv(B, tb) * tb
    if b_pad != B:
        x = jnp.pad(x, ((0, b_pad - B), (0, 0)))
        labels = jnp.pad(labels, (0, b_pad - B))
    # Clamp labels so a bad label (or the zero padding) can never DMA out of
    # bounds.  (PyTorch would raise on an out-of-range label.)
    labels = jnp.clip(labels.astype(jnp.int32), 0, C - 1)

    per_row = pl.pallas_call(
        _center_loss_kernel,
        out_shape=jax.ShapeDtypeStruct((b_pad, 1), jnp.float32),
        grid_spec=pltpu.PrefetchScalarGridSpec(
            num_scalar_prefetch=1,
            grid=(b_pad // tb,),
            in_specs=[
                # x: pipelined (TB, D) batch tiles.
                pl.BlockSpec((tb, D), lambda i, labels_ref: (i, 0)),
                # centers: left in HBM; rows are gathered manually by label.
                pl.BlockSpec(memory_space=pl.ANY),
            ],
            out_specs=pl.BlockSpec((tb, 1), lambda i, labels_ref: (i, 0)),
            scratch_shapes=[
                pltpu.VMEM((tb, D), centers.dtype),
                pltpu.SemaphoreType.DMA((tb,)),
            ],
        ),
        compiler_params=pltpu.CompilerParams(
            dimension_semantics=("parallel",),
        ),
    )(labels, x, centers)

    # Second reduction stage: mean over the valid rows (padding rows ignored).
    return jnp.sum(per_row[:B, 0]) / jnp.float32(B)


def center_loss_ref(x, centers, labels):
    """Pure-JAX reference matching the PyTorch forward."""
    C = centers.shape[0]
    xf = x.astype(jnp.float32)
    cf = centers.astype(jnp.float32)
    distmat = (
        jnp.sum(xf**2, axis=1, keepdims=True)
        + jnp.sum(cf**2, axis=1, keepdims=True).T
        - 2.0 * xf @ cf.T
    )
    mask = labels[:, None] == jnp.arange(C)[None, :]
    vals = jnp.sum(jnp.where(mask, jnp.clip(distmat, 1e-12, 1e12), 0.0), axis=1)
    return jnp.mean(vals)


if __name__ == "__main__":
    num_classes = 10
    feat_dim = 32
    batch = 8

    key = jax.random.PRNGKey(0)
    kx, kc, kl = jax.random.split(key, 3)

    centers = jax.random.normal(kc, (num_classes, feat_dim), dtype=jnp.float32)
    x = jax.random.normal(kx, (batch, feat_dim), dtype=jnp.float32)
    labels = jax.random.randint(kl, (batch,), 0, num_classes, dtype=jnp.int32)

    loss = center_loss(x, centers, labels)
    jax.block_until_ready(loss)

    ref = center_loss_ref(x, centers, labels)
    assert jnp.allclose(loss, ref, rtol=1e-4, atol=1e-4), (loss, ref)

    print("KERNEL_OK")
</pallas_src>

<mosaic_0001>
module attributes {stable_mosaic.version = 11 : i64} {
  func.func @_center_loss_kernel(%arg0: i32, %arg1: memref<8xi32, #tpu.memory_space<smem>>, %arg2: memref<8x32xf32, #tpu.memory_space<vmem>>, %arg3: memref<10x32xf32, #tpu.memory_space<any>>, %arg4: memref<8x1xf32, #tpu.memory_space<vmem>>, %arg5: memref<8x32xf32, #tpu.memory_space<vmem>>, %arg6: memref<8x!tpu.dma_semaphore, #tpu.memory_space<semaphore_mem>>) attributes {dimension_semantics = [#tpu.dimension_semantics<parallel>], iteration_bounds = array<i64: 1>, scalar_prefetch = 1 : i64, scratch_operands = 2 : i64, tpu.core_type = #tpu.core_type<tc>, window_params = [{transform_indices = @transform_0, window_bounds = array<i64: 8, 32>}, {}, {transform_indices = @transform_2, window_bounds = array<i64: 8, 1>}]} {
    %c8_i32 = arith.constant 8 : i32
    %0 = arith.muli %arg0, %c8_i32 : i32
    %c0_i32 = arith.constant 0 : i32
    %1 = arith.addi %0, %c0_i32 : i32
    %2 = arith.index_cast %1 : i32 to index
    %3 = memref.load %arg1[%2] : memref<8xi32, #tpu.memory_space<smem>>
    %c0_i32_0 = arith.constant 0 : i32
    %c0_i32_1 = arith.constant 0 : i32
    %4 = tpu.memref_slice %arg3[%3, %c0_i32_1] : memref<10x32xf32, #tpu.memory_space<any>> -> memref<1x32xf32, #tpu.memory_space<any>>
    %c0_i32_2 = arith.constant 0 : i32
    %c0_i32_3 = arith.constant 0 : i32
    %5 = tpu.memref_slice %arg5[%c0_i32_2, %c0_i32_3] : memref<8x32xf32, #tpu.memory_space<vmem>> -> memref<1x32xf32, #tpu.memory_space<vmem>>
    %6 = tpu.memref_slice %arg6[%c0_i32_0] : memref<8x!tpu.dma_semaphore, #tpu.memory_space<semaphore_mem>> -> memref<1x!tpu.dma_semaphore, #tpu.memory_space<semaphore_mem>>
    %7 = tpu.memref_squeeze %6 : memref<1x!tpu.dma_semaphore, #tpu.memory_space<semaphore_mem>> -> memref<!tpu.dma_semaphore, #tpu.memory_space<semaphore_mem>>
    tpu.enqueue_dma source(%4 : memref<1x32xf32, #tpu.memory_space<any>>) target(%5 : memref<1x32xf32, #tpu.memory_space<vmem>>) target_semaphore(%7 : memref<!tpu.dma_semaphore, #tpu.memory_space<semaphore_mem>>)
    %c1_i32 = arith.constant 1 : i32
    %8 = arith.addi %0, %c1_i32 : i32
    %9 = arith.index_cast %8 : i32 to index
    %10 = memref.load %arg1[%9] : memref<8xi32, #tpu.memory_space<smem>>
    %c1_i32_4 = arith.constant 1 : i32
    %c0_i32_5 = arith.constant 0 : i32
    %11 = tpu.memref_slice %arg3[%10, %c0_i32_5] : memref<10x32xf32, #tpu.memory_space<any>> -> memref<1x32xf32, #tpu.memory_space<any>>
    %c1_i32_6 = arith.constant 1 : i32
    %c0_i32_7 = arith.constant 0 : i32
    %12 = tpu.memref_slice %arg5[%c1_i32_6, %c0_i32_7] : memref<8x32xf32, #tpu.memory_space<vmem>> -> memref<1x32xf32, #tpu.memory_space<vmem>>
    %13 = tpu.memref_slice %arg6[%c1_i32_4] : memref<8x!tpu.dma_semaphore, #tpu.memory_space<semaphore_mem>> -> memref<1x!tpu.dma_semaphore, #tpu.memory_space<semaphore_mem>>
    %14 = tpu.memref_squeeze %13 : memref<1x!tpu.dma_semaphore, #tpu.memory_space<semaphore_mem>> -> memref<!tpu.dma_semaphore, #tpu.memory_space<semaphore_mem>>
    tpu.enqueue_dma source(%11 : memref<1x32xf32, #tpu.memory_space<any>>) target(%12 : memref<1x32xf32, #tpu.memory_space<vmem>>) target_semaphore(%14 : memref<!tpu.dma_semaphore, #tpu.memory_space<semaphore_mem>>)
    %c2_i32 = arith.constant 2 : i32
    %15 = arith.addi %0, %c2_i32 : i32
    %16 = arith.index_cast %15 : i32 to index
    %17 = memref.load %arg1[%16] : memref<8xi32, #tpu.memory_space<smem>>
    %c2_i32_8 = arith.constant 2 : i32
    %c0_i32_9 = arith.constant 0 : i32
    %18 = tpu.memref_slice %arg3[%17, %c0_i32_9] : memref<10x32xf32, #tpu.memory_space<any>> -> memref<1x32xf32, #tpu.memory_space<any>>
    %c2_i32_10 = arith.constant 2 : i32
    %c0_i32_11 = arith.constant 0 : i32
    %19 = tpu.memref_slice %arg5[%c2_i32_10, %c0_i32_11] : memref<8x32xf32, #tpu.memory_space<vmem>> -> memref<1x32xf32, #tpu.memory_space<vmem>>
    %20 = tpu.memref_slice %arg6[%c2_i32_8] : memref<8x!tpu.dma_semaphore, #tpu.memory_space<semaphore_mem>> -> memref<1x!tpu.dma_semaphore, #tpu.memory_space<semaphore_mem>>
    %21 = tpu.memref_squeeze %20 : memref<1x!tpu.dma_semaphore, #tpu.memory_space<semaphore_mem>> -> memref<!tpu.dma_semaphore, #tpu.memory_space<semaphore_mem>>
    tpu.enqueue_dma source(%18 : memref<1x32xf32, #tpu.memory_space<any>>) target(%19 : memref<1x32xf32, #tpu.memory_space<vmem>>) target_semaphore(%21 : memref<!tpu.dma_semaphore, #tpu.memory_space<semaphore_mem>>)
    %c3_i32 = arith.constant 3 : i32
    %22 = arith.addi %0, %c3_i32 : i32
    %23 = arith.index_cast %22 : i32 to index
    %24 = memref.load %arg1[%23] : memref<8xi32, #tpu.memory_space<smem>>
    %c3_i32_12 = arith.constant 3 : i32
    %c0_i32_13 = arith.constant 0 : i32
    %25 = tpu.memref_slice %arg3[%24, %c0_i32_13] : memref<10x32xf32, #tpu.memory_space<any>> -> memref<1x32xf32, #tpu.memory_space<any>>
    %c3_i32_14 = arith.constant 3 : i32
    %c0_i32_15 = arith.constant 0 : i32
    %26 = tpu.memref_slice %arg5[%c3_i32_14, %c0_i32_15] : memref<8x32xf32, #tpu.memory_space<vmem>> -> memref<1x32xf32, #tpu.memory_space<vmem>>
    %27 = tpu.memref_slice %arg6[%c3_i32_12] : memref<8x!tpu.dma_semaphore, #tpu.memory_space<semaphore_mem>> -> memref<1x!tpu.dma_semaphore, #tpu.memory_space<semaphore_mem>>
    %28 = tpu.memref_squeeze %27 : memref<1x!tpu.dma_semaphore, #tpu.memory_space<semaphore_mem>> -> memref<!tpu.dma_semaphore, #tpu.memory_space<semaphore_mem>>
    tpu.enqueue_dma source(%25 : memref<1x32xf32, #tpu.memory_space<any>>) target(%26 : memref<1x32xf32, #tpu.memory_space<vmem>>) target_semaphore(%28 : memref<!tpu.dma_semaphore, #tpu.memory_space<semaphore_mem>>)
    %c4_i32 = arith.constant 4 : i32
    %29 = arith.addi %0, %c4_i32 : i32
    %30 = arith.index_cast %29 : i32 to index
    %31 = memref.load %arg1[%30] : memref<8xi32, #tpu.memory_space<smem>>
    %c4_i32_16 = arith.constant 4 : i32
    %c0_i32_17 = arith.constant 0 : i32
    %32 = tpu.memref_slice %arg3[%31, %c0_i32_17] : memref<10x32xf32, #tpu.memory_space<any>> -> memref<1x32xf32, #tpu.memory_space<any>>
    %c4_i32_18 = arith.constant 4 : i32
    %c0_i32_19 = arith.constant 0 : i32
    %33 = tpu.memref_slice %arg5[%c4_i32_18, %c0_i32_19] : memref<8x32xf32, #tpu.memory_space<vmem>> -> memref<1x32xf32, #tpu.memory_space<vmem>>
    %34 = tpu.memref_slice %arg6[%c4_i32_16] : memref<8x!tpu.dma_semaphore, #tpu.memory_space<semaphore_mem>> -> memref<1x!tpu.dma_semaphore, #tpu.memory_space<semaphore_mem>>
    %35 = tpu.memref_squeeze %34 : memref<1x!tpu.dma_semaphore, #tpu.memory_space<semaphore_mem>> -> memref<!tpu.dma_semaphore, #tpu.memory_space<semaphore_mem>>
    tpu.enqueue_dma source(%32 : memref<1x32xf32, #tpu.memory_space<any>>) target(%33 : memref<1x32xf32, #tpu.memory_space<vmem>>) target_semaphore(%35 : memref<!tpu.dma_semaphore, #tpu.memory_space<semaphore_mem>>)
    %c5_i32 = arith.constant 5 : i32
    %36 = arith.addi %0, %c5_i32 : i32
    %37 = arith.index_cast %36 : i32 to index
    %38 = memref.load %arg1[%37] : memref<8xi32, #tpu.memory_space<smem>>
    %c5_i32_20 = arith.constant 5 : i32
    %c0_i32_21 = arith.constant 0 : i32
    %39 = tpu.memref_slice %arg3[%38, %c0_i32_21] : memref<10x32xf32, #tpu.memory_space<any>> -> memref<1x32xf32, #tpu.memory_space<any>>
    %c5_i32_22 = arith.constant 5 : i32
    %c0_i32_23 = arith.constant 0 : i32
    %40 = tpu.memref_slice %arg5[%c5_i32_22, %c0_i32_23] : memref<8x32xf32, #tpu.memory_space<vmem>> -> memref<1x32xf32, #tpu.memory_space<vmem>>
    %41 = tpu.memref_slice %arg6[%c5_i32_20] : memref<8x!tpu.dma_semaphore, #tpu.memory_space<semaphore_mem>> -> memref<1x!tpu.dma_semaphore, #tpu.memory_space<semaphore_mem>>
    %42 = tpu.memref_squeeze %41 : memref<1x!tpu.dma_semaphore, #tpu.memory_space<semaphore_mem>> -> memref<!tpu.dma_semaphore, #tpu.memory_space<semaphore_mem>>
    tpu.enqueue_dma source(%39 : memref<1x32xf32, #tpu.memory_space<any>>) target(%40 : memref<1x32xf32, #tpu.memory_space<vmem>>) target_semaphore(%42 : memref<!tpu.dma_semaphore, #tpu.memory_space<semaphore_mem>>)
    %c6_i32 = arith.constant 6 : i32
    %43 = arith.addi %0, %c6_i32 : i32
    %44 = arith.index_cast %43 : i32 to index
    %45 = memref.load %arg1[%44] : memref<8xi32, #tpu.memory_space<smem>>
    %c6_i32_24 = arith.constant 6 : i32
    %c0_i32_25 = arith.constant 0 : i32
    %46 = tpu.memref_slice %arg3[%45, %c0_i32_25] : memref<10x32xf32, #tpu.memory_space<any>> -> memref<1x32xf32, #tpu.memory_space<any>>
    %c6_i32_26 = arith.constant 6 : i32
    %c0_i32_27 = arith.constant 0 : i32
    %47 = tpu.memref_slice %arg5[%c6_i32_26, %c0_i32_27] : memref<8x32xf32, #tpu.memory_space<vmem>> -> memref<1x32xf32, #tpu.memory_space<vmem>>
    %48 = tpu.memref_slice %arg6[%c6_i32_24] : memref<8x!tpu.dma_semaphore, #tpu.memory_space<semaphore_mem>> -> memref<1x!tpu.dma_semaphore, #tpu.memory_space<semaphore_mem>>
    %49 = tpu.memref_squeeze %48 : memref<1x!tpu.dma_semaphore, #tpu.memory_space<semaphore_mem>> -> memref<!tpu.dma_semaphore, #tpu.memory_space<semaphore_mem>>
    tpu.enqueue_dma source(%46 : memref<1x32xf32, #tpu.memory_space<any>>) target(%47 : memref<1x32xf32, #tpu.memory_space<vmem>>) target_semaphore(%49 : memref<!tpu.dma_semaphore, #tpu.memory_space<semaphore_mem>>)
    %c7_i32 = arith.constant 7 : i32
    %50 = arith.addi %0, %c7_i32 : i32
    %51 = arith.index_cast %50 : i32 to index
    %52 = memref.load %arg1[%51] : memref<8xi32, #tpu.memory_space<smem>>
    %c7_i32_28 = arith.constant 7 : i32
    %c0_i32_29 = arith.constant 0 : i32
    %53 = tpu.memref_slice %arg3[%52, %c0_i32_29] : memref<10x32xf32, #tpu.memory_space<any>> -> memref<1x32xf32, #tpu.memory_space<any>>
    %c7_i32_30 = arith.constant 7 : i32
    %c0_i32_31 = arith.constant 0 : i32
    %54 = tpu.memref_slice %arg5[%c7_i32_30, %c0_i32_31] : memref<8x32xf32, #tpu.memory_space<vmem>> -> memref<1x32xf32, #tpu.memory_space<vmem>>
    %55 = tpu.memref_slice %arg6[%c7_i32_28] : memref<8x!tpu.dma_semaphore, #tpu.memory_space<semaphore_mem>> -> memref<1x!tpu.dma_semaphore, #tpu.memory_space<semaphore_mem>>
    %56 = tpu.memref_squeeze %55 : memref<1x!tpu.dma_semaphore, #tpu.memory_space<semaphore_mem>> -> memref<!tpu.dma_semaphore, #tpu.memory_space<semaphore_mem>>
    tpu.enqueue_dma source(%53 : memref<1x32xf32, #tpu.memory_space<any>>) target(%54 : memref<1x32xf32, #tpu.memory_space<vmem>>) target_semaphore(%56 : memref<!tpu.dma_semaphore, #tpu.memory_space<semaphore_mem>>)
    %c0_i32_32 = arith.constant 0 : i32
    %c0_i32_33 = arith.constant 0 : i32
    %57 = tpu.memref_slice %arg3[%3, %c0_i32_33] : memref<10x32xf32, #tpu.memory_space<any>> -> memref<1x32xf32, #tpu.memory_space<any>>
    %c0_i32_34 = arith.constant 0 : i32
    %c0_i32_35 = arith.constant 0 : i32
    %58 = tpu.memref_slice %arg5[%c0_i32_34, %c0_i32_35] : memref<8x32xf32, #tpu.memory_space<vmem>> -> memref<1x32xf32, #tpu.memory_space<vmem>>
    %59 = tpu.memref_slice %arg6[%c0_i32_32] : memref<8x!tpu.dma_semaphore, #tpu.memory_space<semaphore_mem>> -> memref<1x!tpu.dma_semaphore, #tpu.memory_space<semaphore_mem>>
    %60 = tpu.memref_squeeze %59 : memref<1x!tpu.dma_semaphore, #tpu.memory_space<semaphore_mem>> -> memref<!tpu.dma_semaphore, #tpu.memory_space<semaphore_mem>>
    tpu.wait_dma2 semaphore(%60 : memref<!tpu.dma_semaphore, #tpu.memory_space<semaphore_mem>>) src(%57 : memref<1x32xf32, #tpu.memory_space<any>>) dst(%58 : memref<1x32xf32, #tpu.memory_space<vmem>>)
    %c1_i32_36 = arith.constant 1 : i32
    %c0_i32_37 = arith.constant 0 : i32
    %61 = tpu.memref_slice %arg3[%10, %c0_i32_37] : memref<10x32xf32, #tpu.memory_space<any>> -> memref<1x32xf32, #tpu.memory_space<any>>
    %c1_i32_38 = arith.constant 1 : i32
    %c0_i32_39 = arith.constant 0 : i32
    %62 = tpu.memref_slice %arg5[%c1_i32_38, %c0_i32_39] : memref<8x32xf32, #tpu.memory_space<vmem>> -> memref<1x32xf32, #tpu.memory_space<vmem>>
    %63 = tpu.memref_slice %arg6[%c1_i32_36] : memref<8x!tpu.dma_semaphore, #tpu.memory_space<semaphore_mem>> -> memref<1x!tpu.dma_semaphore, #tpu.memory_space<semaphore_mem>>
    %64 = tpu.memref_squeeze %63 : memref<1x!tpu.dma_semaphore, #tpu.memory_space<semaphore_mem>> -> memref<!tpu.dma_semaphore, #tpu.memory_space<semaphore_mem>>
    tpu.wait_dma2 semaphore(%64 : memref<!tpu.dma_semaphore, #tpu.memory_space<semaphore_mem>>) src(%61 : memref<1x32xf32, #tpu.memory_space<any>>) dst(%62 : memref<1x32xf32, #tpu.memory_space<vmem>>)
    %c2_i32_40 = arith.constant 2 : i32
    %c0_i32_41 = arith.constant 0 : i32
    %65 = tpu.memref_slice %arg3[%17, %c0_i32_41] : memref<10x32xf32, #tpu.memory_space<any>> -> memref<1x32xf32, #tpu.memory_space<any>>
    %c2_i32_42 = arith.constant 2 : i32
    %c0_i32_43 = arith.constant 0 : i32
    %66 = tpu.memref_slice %arg5[%c2_i32_42, %c0_i32_43] : memref<8x32xf32, #tpu.memory_space<vmem>> -> memref<1x32xf32, #tpu.memory_space<vmem>>
    %67 = tpu.memref_slice %arg6[%c2_i32_40] : memref<8x!tpu.dma_semaphore, #tpu.memory_space<semaphore_mem>> -> memref<1x!tpu.dma_semaphore, #tpu.memory_space<semaphore_mem>>
    %68 = tpu.memref_squeeze %67 : memref<1x!tpu.dma_semaphore, #tpu.memory_space<semaphore_mem>> -> memref<!tpu.dma_semaphore, #tpu.memory_space<semaphore_mem>>
    tpu.wait_dma2 semaphore(%68 : memref<!tpu.dma_semaphore, #tpu.memory_space<semaphore_mem>>) src(%65 : memref<1x32xf32, #tpu.memory_space<any>>) dst(%66 : memref<1x32xf32, #tpu.memory_space<vmem>>)
    %c3_i32_44 = arith.constant 3 : i32
    %c0_i32_45 = arith.constant 0 : i32
    %69 = tpu.memref_slice %arg3[%24, %c0_i32_45] : memref<10x32xf32, #tpu.memory_space<any>> -> memref<1x32xf32, #tpu.memory_space<any>>
    %c3_i32_46 = arith.constant 3 : i32
    %c0_i32_47 = arith.constant 0 : i32
    %70 = tpu.memref_slice %arg5[%c3_i32_46, %c0_i32_47] : memref<8x32xf32, #tpu.memory_space<vmem>> -> memref<1x32xf32, #tpu.memory_space<vmem>>
    %71 = tpu.memref_slice %arg6[%c3_i32_44] : memref<8x!tpu.dma_semaphore, #tpu.memory_space<semaphore_mem>> -> memref<1x!tpu.dma_semaphore, #tpu.memory_space<semaphore_mem>>
    %72 = tpu.memref_squeeze %71 : memref<1x!tpu.dma_semaphore, #tpu.memory_space<semaphore_mem>> -> memref<!tpu.dma_semaphore, #tpu.memory_space<semaphore_mem>>
    tpu.wait_dma2 semaphore(%72 : memref<!tpu.dma_semaphore, #tpu.memory_space<semaphore_mem>>) src(%69 : memref<1x32xf32, #tpu.memory_space<any>>) dst(%70 : memref<1x32xf32, #tpu.memory_space<vmem>>)
    %c4_i32_48 = arith.constant 4 : i32
    %c0_i32_49 = arith.constant 0 : i32
    %73 = tpu.memref_slice %arg3[%31, %c0_i32_49] : memref<10x32xf32, #tpu.memory_space<any>> -> memref<1x32xf32, #tpu.memory_space<any>>
    %c4_i32_50 = arith.constant 4 : i32
    %c0_i32_51 = arith.constant 0 : i32
    %74 = tpu.memref_slice %arg5[%c4_i32_50, %c0_i32_51] : memref<8x32xf32, #tpu.memory_space<vmem>> -> memref<1x32xf32, #tpu.memory_space<vmem>>
    %75 = tpu.memref_slice %arg6[%c4_i32_48] : memref<8x!tpu.dma_semaphore, #tpu.memory_space<semaphore_mem>> -> memref<1x!tpu.dma_semaphore, #tpu.memory_space<semaphore_mem>>
    %76 = tpu.memref_squeeze %75 : memref<1x!tpu.dma_semaphore, #tpu.memory_space<semaphore_mem>> -> memref<!tpu.dma_semaphore, #tpu.memory_space<semaphore_mem>>
    tpu.wait_dma2 semaphore(%76 : memref<!tpu.dma_semaphore, #tpu.memory_space<semaphore_mem>>) src(%73 : memref<1x32xf32, #tpu.memory_space<any>>) dst(%74 : memref<1x32xf32, #tpu.memory_space<vmem>>)
    %c5_i32_52 = arith.constant 5 : i32
    %c0_i32_53 = arith.constant 0 : i32
    %77 = tpu.memref_slice %arg3[%38, %c0_i32_53] : memref<10x32xf32, #tpu.memory_space<any>> -> memref<1x32xf32, #tpu.memory_space<any>>
    %c5_i32_54 = arith.constant 5 : i32
    %c0_i32_55 = arith.constant 0 : i32
    %78 = tpu.memref_slice %arg5[%c5_i32_54, %c0_i32_55] : memref<8x32xf32, #tpu.memory_space<vmem>> -> memref<1x32xf32, #tpu.memory_space<vmem>>
    %79 = tpu.memref_slice %arg6[%c5_i32_52] : memref<8x!tpu.dma_semaphore, #tpu.memory_space<semaphore_mem>> -> memref<1x!tpu.dma_semaphore, #tpu.memory_space<semaphore_mem>>
    %80 = tpu.memref_squeeze %79 : memref<1x!tpu.dma_semaphore, #tpu.memory_space<semaphore_mem>> -> memref<!tpu.dma_semaphore, #tpu.memory_space<semaphore_mem>>
    tpu.wait_dma2 semaphore(%80 : memref<!tpu.dma_semaphore, #tpu.memory_space<semaphore_mem>>) src(%77 : memref<1x32xf32, #tpu.memory_space<any>>) dst(%78 : memref<1x32xf32, #tpu.memory_space<vmem>>)
    %c6_i32_56 = arith.constant 6 : i32
    %c0_i32_57 = arith.constant 0 : i32
    %81 = tpu.memref_slice %arg3[%45, %c0_i32_57] : memref<10x32xf32, #tpu.memory_space<any>> -> memref<1x32xf32, #tpu.memory_space<any>>
    %c6_i32_58 = arith.constant 6 : i32
    %c0_i32_59 = arith.constant 0 : i32
    %82 = tpu.memref_slice %arg5[%c6_i32_58, %c0_i32_59] : memref<8x32xf32, #tpu.memory_space<vmem>> -> memref<1x32xf32, #tpu.memory_space<vmem>>
    %83 = tpu.memref_slice %arg6[%c6_i32_56] : memref<8x!tpu.dma_semaphore, #tpu.memory_space<semaphore_mem>> -> memref<1x!tpu.dma_semaphore, #tpu.memory_space<semaphore_mem>>
    %84 = tpu.memref_squeeze %83 : memref<1x!tpu.dma_semaphore, #tpu.memory_space<semaphore_mem>> -> memref<!tpu.dma_semaphore, #tpu.memory_space<semaphore_mem>>
    tpu.wait_dma2 semaphore(%84 : memref<!tpu.dma_semaphore, #tpu.memory_space<semaphore_mem>>) src(%81 : memref<1x32xf32, #tpu.memory_space<any>>) dst(%82 : memref<1x32xf32, #tpu.memory_space<vmem>>)
    %c7_i32_60 = arith.constant 7 : i32
    %c0_i32_61 = arith.constant 0 : i32
    %85 = tpu.memref_slice %arg3[%52, %c0_i32_61] : memref<10x32xf32, #tpu.memory_space<any>> -> memref<1x32xf32, #tpu.memory_space<any>>
    %c7_i32_62 = arith.constant 7 : i32
    %c0_i32_63 = arith.constant 0 : i32
    %86 = tpu.memref_slice %arg5[%c7_i32_62, %c0_i32_63] : memref<8x32xf32, #tpu.memory_space<vmem>> -> memref<1x32xf32, #tpu.memory_space<vmem>>
    %87 = tpu.memref_slice %arg6[%c7_i32_60] : memref<8x!tpu.dma_semaphore, #tpu.memory_space<semaphore_mem>> -> memref<1x!tpu.dma_semaphore, #tpu.memory_space<semaphore_mem>>
    %88 = tpu.memref_squeeze %87 : memref<1x!tpu.dma_semaphore, #tpu.memory_space<semaphore_mem>> -> memref<!tpu.dma_semaphore, #tpu.memory_space<semaphore_mem>>
    tpu.wait_dma2 semaphore(%88 : memref<!tpu.dma_semaphore, #tpu.memory_space<semaphore_mem>>) src(%85 : memref<1x32xf32, #tpu.memory_space<any>>) dst(%86 : memref<1x32xf32, #tpu.memory_space<vmem>>)
    %c0 = arith.constant 0 : index
    %c0_64 = arith.constant 0 : index
    %89 = vector.load %arg2[%c0, %c0_64] : memref<8x32xf32, #tpu.memory_space<vmem>>, vector<8x32xf32>
    %c0_65 = arith.constant 0 : index
    %c0_66 = arith.constant 0 : index
    %90 = vector.load %arg5[%c0_65, %c0_66] : memref<8x32xf32, #tpu.memory_space<vmem>>, vector<8x32xf32>
    %91 = arith.subf %89, %90 : vector<8x32xf32>
    %92 = arith.mulf %91, %91 : vector<8x32xf32>
    %cst = arith.constant dense<0.000000e+00> : vector<8xf32>
    %93 = vector.multi_reduction <add>, %92, %cst [1] : vector<8x32xf32> to vector<8xf32>
    %94 = vector.shape_cast %93 : vector<8xf32> to vector<8x1xf32>
    %cst_67 = arith.constant 9.99999996E-13 : f32
    %cst_68 = arith.constant 9.99999995E+11 : f32
    %95 = vector.broadcast %cst_67 : f32 to vector<8x1xf32>
    %96 = arith.maximumf %95, %94 : vector<8x1xf32>
    %97 = vector.broadcast %cst_68 : f32 to vector<8x1xf32>
    %98 = arith.minimumf %97, %96 : vector<8x1xf32>
    %c0_69 = arith.constant 0 : index
    %c0_70 = arith.constant 0 : index
    %99 = vector.load %arg4[%c0_69, %c0_70] : memref<8x1xf32, #tpu.memory_space<vmem>>, vector<8x1xf32>
    tpu.vector_store %arg4[%c0_69, %c0_70], %98 {strides = array<i32>} : memref<8x1xf32, #tpu.memory_space<vmem>>, vector<8x1xf32>,
    return
  }
  func.func @transform_0(%arg0: i32, %arg1: memref<8xi32, #tpu.memory_space<smem>>) -> (i32, i32) {
    %c0_i32 = arith.constant 0 : i32
    %c0_i32_0 = arith.constant 0 : i32
    return %arg0, %c0_i32 : i32, i32
  }
  func.func @transform_2(%arg0: i32, %arg1: memref<8xi32, #tpu.memory_space<smem>>) -> (i32, i32) {
    %c0_i32 = arith.constant 0 : i32
    %c0_i32_0 = arith.constant 0 : i32
    return %arg0, %c0_i32 : i32, i32
  }
}

</mosaic_0001>

<bundles_post_ra>
// kernel: tpu_custom_call.1
= control target key start
LH: loop header
LB: loop body
LE: loop exit
PB: predicated region body
PF: predicated region fallthrough
CT: control target
= control target key end

     0   :  { %s544_s15 = smov [#allocation5]   ;;  %s682_s0 = inlined_call_operand.hbm [shape: s32[8], index: 0, kind: input, shape index: {}]   ;;  %s683_s1 = inlined_call_operand.hbm [shape: f32[8,32], index: 1, kind: input, shape index: {}]   ;;  %s684_s2 = inlined_call_operand.hbm [shape: f32[10,32], index: 2, kind: input, shape index: {}]   ;;  %s685_s3 = inlined_call_operand.vmem [shape: f32[8,1], index: 3, kind: output, shape index: {}]  }
   0x1   :  { %s9_s14 = sshll.u32 %s682_s0, 4  ;;  %s10_s14 = int_to_ptr.hbm [resolvable:$true] %s9_s14 }
   0x2   :  { %12 = dma.hbm_to_smem %s10_s14, 16, %s544_s15, [#allocation4] }
   0x3   :  { %524 = dma.done.wait [#allocation4], 16 }
   0x4   :  { %525 = vsyncadd [#allocation4], 4294967280 }
   0x5   :  { %15 = sfence }
   0x6   :  { %16 = vsyncpa [#allocation7], 0  ;;  %s22_s18 = sshll.u32 %s683_s1, 4  ;;  %s545_s19 = smov [#allocation6]   ;;  %s23_s18 = int_to_ptr.hbm [resolvable:$true] %s22_s18 }
   0x7   :  { %s24_s20 = sshll.u32 %s545_s19, 4  ;;  %s25_s20 = int_to_ptr.vmem [resolvable:$true] %s24_s20 }
   0x8   :  { %27 = dma.hbm_to_vmem [thread:$0]  %s23_s18, 128, %s25_s20, [#allocation7]  }
   0x9   :  { %526 = dma.done.wait [#allocation7], 128  }
   0xa   :  { %527 = vsyncadd [#allocation7], 4294967168  ;;  %s33_s21 = sld [smem:[#allocation5]]  ;;  %s546_s0 = smov [#allocation2]  }
   0xb   :  { %s580_s22 = sshll.u32 %s546_s0, 4  ;;  %s271_s23 = sld [smem:[#allocation5 + $0x1]]  ;;  %s45_s22 = int_to_ptr.vmem [resolvable:$true] %s580_s22 }
   0xc   :  { %s547_s24 = smov [#allocation2 + $0x1]   ;;  %s585_s26 = sld [smem:[#allocation5 + $0x2]] }
   0xd   :  { %s583_s25 = sshll.u32 %s547_s24, 4  ;;  %s548_s1 = smov [#allocation2 + $0x2]   ;;  %s63_s25 = int_to_ptr.vmem [resolvable:$true] %s583_s25 }
   0xe   :  { %s588_s27 = sshll.u32 %s548_s1, 4  ;;  %s590_s28 = sld [smem:[#allocation5 + $0x3]]  ;;  %s81_s27 = int_to_ptr.vmem [resolvable:$true] %s588_s27 }
   0xf   :  { %s549_s5 = smov [#allocation2 + $0x3]   ;;  %s604_s16 = scalar_lea.hbm %s684_s2, 16 }
  0x10   :  { %s34_s4 = scalar_lea.hbm %s684_s2, %s33_s21  ;;  %s596_s6 = sshll.u32 %s549_s5, 4  ;;  %s99_s6 = int_to_ptr.vmem [resolvable:$true] %s596_s6 }
  0x11   :  { %s42_s7 = sshll.u32 %s34_s4, 4  ;;  %s50_s10 = scalar_lea.hbm %s684_s2, %s271_s23  ;;  %s43_s7 = int_to_ptr.hbm [resolvable:$true] %s42_s7 }
  0x12   :  { %s60_s11 = sshll.u32 %s50_s10, 4  ;;  %s332_s12 = sshra.s32 %s43_s7, 4  ;;  %s333_s12 = int_to_ptr.hbm [resolvable:$true] %s332_s12  ;;  %s61_s11 = int_to_ptr.hbm [resolvable:$true] %s60_s11 }
  0x13   :  { %s334_s13 = scalar_lea.hbm %s333_s12, 1  ;;  %p337_p1 = scmp.lt.s32.totalorder %s333_s12, %s684_s2 }
  0x14   :  { %p335_p0 = scmp.ne.s32.totalorder %s333_s12, %s334_s13  ;;  %p338_p2 = scmp.lt.s32.totalorder %s604_s16, %s334_s13 }
  0x16   :  { %p339_p3 = por %p338_p2, %p337_p1 }
  0x18   :  { %p340_p4 = pnand %p339_p3, %p335_p0 }
  0x1a   :  { %343 = shalt.err (!%p340_p4)  }
  0x1b   :  { %47 = dma.hbm_to_vmem [thread:$0]  %s43_s7, 16, %s45_s22, [#allocation3] }
  0x1c   :  { %s68_s21 = scalar_lea.hbm %s684_s2, %s585_s26  ;;  %s356_s0 = sshra.s32 %s61_s11, 4  ;;  %s357_s0 = int_to_ptr.hbm [resolvable:$true] %s356_s0 }
  0x1d   :  { %s358_s23 = scalar_lea.hbm %s357_s0, 1  ;;  %p361_p6 = scmp.lt.s32.totalorder %s357_s0, %s684_s2 }
  0x1e   :  { %p359_p5 = scmp.ne.s32.totalorder %s357_s0, %s358_s23  ;;  %p362_p7 = scmp.lt.s32.totalorder %s604_s16, %s358_s23 }
  0x20   :  { %p363_p8 = por %p362_p7, %p361_p6 }
  0x22   :  { %p364_p9 = pnand %p363_p8, %p359_p5 }
  0x24   :  { %367 = shalt.err (!%p364_p9)  }
  0x25   :  { %65 = dma.hbm_to_vmem [thread:$0]  %s61_s11, 16, %s63_s25, [#allocation3 + $0x1] }
  0x26   :  { %s78_s22 = sshll.u32 %s68_s21, 4  ;;  %s86_s30 = scalar_lea.hbm %s684_s2, %s590_s28  ;;  %s79_s22 = int_to_ptr.hbm [resolvable:$true] %s78_s22 }
  0x27   :  { %s96_s4 = sshll.u32 %s86_s30, 4  ;;  %s380_s5 = sshra.s32 %s79_s22, 4  ;;  %s381_s5 = int_to_ptr.hbm [resolvable:$true] %s380_s5  ;;  %s97_s4 = int_to_ptr.hbm [resolvable:$true] %s96_s4 }
  0x28   :  { %s382_s7 = scalar_lea.hbm %s381_s5, 1  ;;  %p385_p11 = scmp.lt.s32.totalorder %s381_s5, %s684_s2 }
  0x29   :  { %p383_p10 = scmp.ne.s32.totalorder %s381_s5, %s382_s7  ;;  %p386_p12 = scmp.lt.s32.totalorder %s604_s16, %s382_s7 }
  0x2b   :  { %p387_p13 = por %p386_p12, %p385_p11 }
  0x2d   :  { %p388_p0 = pnand %p387_p13, %p383_p10 }
  0x2f   :  { %391 = shalt.err (!%p388_p0)  }
  0x30   :  { %83 = dma.hbm_to_vmem [thread:$0]  %s79_s22, 16, %s81_s27, [#allocation3 + $0x2] }
  0x31   :  { %s404_s25 = sshra.s32 %s97_s4, 4  ;;  %s405_s25 = int_to_ptr.hbm [resolvable:$true] %s404_s25 }
  0x32   :  { %s406_s28 = scalar_lea.hbm %s405_s25, 1  ;;  %p409_p2 = scmp.lt.s32.totalorder %s405_s25, %s684_s2 }
  0x33   :  { %p407_p1 = scmp.ne.s32.totalorder %s405_s25, %s406_s28  ;;  %p410_p3 = scmp.lt.s32.totalorder %s604_s16, %s406_s28 }
  0x35   :  { %p411_p4 = por %p410_p3, %p409_p2 }
  0x37   :  { %p412_p5 = pnand %p411_p4, %p407_p1 }
  0x39   :  { %415 = shalt.err (!%p412_p5)  }
  0x3a   :  { %101 = dma.hbm_to_vmem [thread:$0]  %s97_s4, 16, %s99_s6, [#allocation3 + $0x3] }
  0x3b   :  { %s274_s12 = sld [smem:[#allocation5 + $0x4]]  ;;  %s550_s13 = smov [#allocation2 + $0x4]  }
  0x3c   :  { %s116_s14 = sshll.u32 %s550_s13, 4  ;;  %s275_s15 = sld [smem:[#allocation5 + $0x5]]  ;;  %s117_s14 = int_to_ptr.vmem [resolvable:$true] %s116_s14 }
  0x3d   :  { %s551_s27 = smov [#allocation2 + $0x5]   ;;  %s637_s18 = sld [smem:[#allocation5 + $0x6]] }
  0x3e   :  { %s635_s17 = sshll.u32 %s551_s27, 4  ;;  %s552_s19 = smov [#allocation2 + $0x6]   ;;  %s135_s17 = int_to_ptr.vmem [resolvable:$true] %s635_s17 }
  0x3f   :  { %s640_s20 = sshll.u32 %s552_s19, 4  ;;  %s642_s21 = sld [smem:[#allocation5 + $0x7]]  ;;  %s153_s20 = int_to_ptr.vmem [resolvable:$true] %s640_s20 }
  0x41   :  { %s104_s23 = scalar_lea.hbm %s684_s2, %s274_s12 }
  0x42   :  { %s114_s24 = sshll.u32 %s104_s23, 4  ;;  %s122_s29 = scalar_lea.hbm %s684_s2, %s275_s15  ;;  %s115_s24 = int_to_ptr.hbm [resolvable:$true] %s114_s24 }
  0x43   :  { %s132_s26 = sshll.u32 %s122_s29, 4  ;;  %s428_s30 = sshra.s32 %s115_s24, 4  ;;  %s429_s30 = int_to_ptr.hbm [resolvable:$true] %s428_s30  ;;  %s133_s26 = int_to_ptr.hbm [resolvable:$true] %s132_s26 }
  0x44   :  { %s430_s4 = scalar_lea.hbm %s429_s30, 1  ;;  %p433_p7 = scmp.lt.s32.totalorder %s429_s30, %s684_s2 }
  0x45   :  { %p431_p6 = scmp.ne.s32.totalorder %s429_s30, %s430_s4  ;;  %p434_p8 = scmp.lt.s32.totalorder %s604_s16, %s430_s4 }
  0x47   :  { %p435_p9 = por %p434_p8, %p433_p7 }
  0x49   :  { %p436_p10 = pnand %p435_p9, %p431_p6 }
  0x4b   :  { %439 = shalt.err (!%p436_p10)  }
  0x4c   :  { %119 = dma.hbm_to_vmem [thread:$0]  %s115_s24, 16, %s117_s14, [#allocation3 + $0x4] }
  0x4d   :  { %s140_s25 = scalar_lea.hbm %s684_s2, %s637_s18  ;;  %s452_s28 = sshra.s32 %s133_s26, 4  ;;  %s453_s28 = int_to_ptr.hbm [resolvable:$true] %s452_s28 }
  0x4e   :  { %s454_s10 = scalar_lea.hbm %s453_s28, 1  ;;  %p457_p12 = scmp.lt.s32.totalorder %s453_s28, %s684_s2 }
  0x4f   :  { %p455_p11 = scmp.ne.s32.totalorder %s453_s28, %s454_s10  ;;  %p458_p13 = scmp.lt.s32.totalorder %s604_s16, %s454_s10 }
  0x51   :  { %p459_p0 = por %p458_p13, %p457_p12 }
  0x53   :  { %p460_p1 = pnand %p459_p0, %p455_p11 }
  0x55   :  { %463 = shalt.err (!%p460_p1)  }
  0x56   :  { %137 = dma.hbm_to_vmem [thread:$0]  %s133_s26, 16, %s135_s17, [#allocation3 + $0x5] }
  0x57   :  { %s150_s13 = sshll.u32 %s140_s25, 4  ;;  %s158_s27 = scalar_lea.hbm %s684_s2, %s642_s21  ;;  %s151_s13 = int_to_ptr.hbm [resolvable:$true] %s150_s13 }
  0x58   :  { %s168_s18 = sshll.u32 %s158_s27, 4  ;;  %s476_s19 = sshra.s32 %s151_s13, 4  ;;  %s477_s19 = int_to_ptr.hbm [resolvable:$true] %s476_s19  ;;  %s169_s18 = int_to_ptr.hbm [resolvable:$true] %s168_s18 }
  0x59   :  { %s478_s6 = scalar_lea.hbm %s477_s19, 1  ;;  %p481_p3 = scmp.lt.s32.totalorder %s477_s19, %s684_s2 }
  0x5a   :  { %p479_p2 = scmp.ne.s32.totalorder %s477_s19, %s478_s6  ;;  %p482_p4 = scmp.lt.s32.totalorder %s604_s16, %s478_s6 }
  0x5c   :  { %p483_p5 = por %p482_p4, %p481_p3 }
  0x5e   :  { %p484_p6 = pnand %p483_p5, %p479_p2 }
  0x60   :  { %487 = shalt.err (!%p484_p6)  }
  0x61   :  { %155 = dma.hbm_to_vmem [thread:$0]  %s151_s13, 16, %s153_s20, [#allocation3 + $0x6] }
  0x62   :  { %s553_s17 = smov [#allocation2 + $0x7]   ;;  %s500_s24 = sshra.s32 %s169_s18, 4  ;;  %s501_s24 = int_to_ptr.hbm [resolvable:$true] %s500_s24 }
  0x63   :  { %s170_s21 = sshll.u32 %s553_s17, 4  ;;  %s502_s1 = scalar_lea.hbm %s501_s24, 1  ;;  %s171_s21 = int_to_ptr.vmem [resolvable:$true] %s170_s21 }
  0x64   :  { %p503_p7 = scmp.ne.s32.totalorder %s501_s24, %s502_s1  ;;  %p505_p8 = scmp.lt.s32.totalorder %s501_s24, %s684_s2 }
  0x65   :  { %p506_p9 = scmp.lt.s32.totalorder %s604_s16, %s502_s1 }
  0x67   :  { %p507_p10 = por %p506_p9, %p505_p8 }
  0x69   :  { %p508_p11 = pnand %p507_p10, %p503_p7 }
  0x6b   :  { %511 = shalt.err (!%p508_p11)  }
  0x6c   :  { %173 = dma.hbm_to_vmem [thread:$0]  %s169_s18, 16, %s171_s21, [#allocation3 + $0x7] }
  0x6d   :  { %528 = dma.done.wait [#allocation3], 16 }
  0x6e   :  { %529 = vsyncadd [#allocation3], 4294967280 }
  0x6f   :  { %530 = dma.done.wait [#allocation3 + $0x1], 16 }
  0x70   :  { %531 = vsyncadd [#allocation3 + $0x1], 4294967280 }
  0x71   :  { %532 = dma.done.wait [#allocation3 + $0x2], 16 }
  0x72   :  { %533 = vsyncadd [#allocation3 + $0x2], 4294967280 }
  0x73   :  { %534 = dma.done.wait [#allocation3 + $0x3], 16 }
  0x74   :  { %535 = vsyncadd [#allocation3 + $0x3], 4294967280 }
  0x75   :  { %536 = dma.done.wait [#allocation3 + $0x4], 16 }
  0x76   :  { %537 = vsyncadd [#allocation3 + $0x4], 4294967280 }
  0x77   :  { %538 = dma.done.wait [#allocation3 + $0x5], 16 }
  0x78   :  { %539 = vsyncadd [#allocation3 + $0x5], 4294967280 }
  0x79   :  { %540 = dma.done.wait [#allocation3 + $0x6], 16 }
  0x7a   :  { %541 = vsyncadd [#allocation3 + $0x6], 4294967280 }
  0x7b   :  { %542 = dma.done.wait [#allocation3 + $0x7], 16 }
  0x7c   :  { %543 = vsyncadd [#allocation3 + $0x7], 4294967280  ;;  %v191_v0 = vld [vmem:[#allocation6] sm:$0xff]  ;;  %v192_v1 = vld [vmem:[#allocation2] sm:$0xff]  ;;  %vm195_vm0 = vcmask 261120   ;;  %vm201_vm1 = vcmask 7168  }
  0x7d   :  { %v193_v2 = vsub.f32 %v191_v0, %v192_v1 }
  0x7f   :  { %v194_v3 = vmul.f32 %v193_v2, %v193_v2 }
  0x81   :  { %v196_v4 = vsel %vm195_vm0, %v194_v3, 0.0 }
  0x82   :  { %197 = vadd.xlane.f32.xlu0 %v196_v4 }
  0xf5   :  { %v198_v5 = vpop.xlane.xlu0 %197 }
  0xf6   :  { %v199_v6 = vmax.f32 %v198_v5, 1e-12 }
  0xf8   :  { %v200_v7 = vmin.f32 %v199_v6, 1e+12 }
  0xfa   :  { %202 = vst.msk [vmem:[%s685_s3] sm:$0xff] %vm201_vm1, %v200_v7 }
  0xfb   :  { %207 = vsyncpa [#allocation7], 1 }
  0xfc   :  { %208 = vsyncmov [#allocation3] }
  0xff   :  { %s209_s20 = vpop.sfrf %208 }
 0x100   :  { %p278_p12 = scmp.ne.s32.totalorder %s209_s20, 0 }
 0x102   :  { %213 = shalt.err (%p278_p12)  }
 0x103   :  { %215 = vsyncmov [#allocation3 + $0x1] }
 0x106   :  { %s216_s26 = vpop.sfrf %215 }
 0x107   :  { %p279_p13 = scmp.ne.s32.totalorder %s216_s26, 0 }
 0x109   :  { %220 = shalt.err (%p279_p13)  }
 0x10a   :  { %222 = vsyncmov [#allocation3 + $0x2] }
 0x10d   :  { %s223_s30 = vpop.sfrf %222 }
 0x10e   :  { %p280_p0 = scmp.ne.s32.totalorder %s223_s30, 0 }
 0x110   :  { %227 = shalt.err (%p280_p0)  }
 0x111   :  { %229 = vsyncmov [#allocation3 + $0x3] }
 0x114   :  { %s230_s4 = vpop.sfrf %229 }
 0x115   :  { %p281_p1 = scmp.ne.s32.totalorder %s230_s4, 0 }
 0x117   :  { %234 = shalt.err (%p281_p1)  }
 0x118   :  { %236 = vsyncmov [#allocation3 + $0x4] }
 0x11b   :  { %s237_s5 = vpop.sfrf %236 }
 0x11c   :  { %p282_p2 = scmp.ne.s32.totalorder %s237_s5, 0 }
 0x11e   :  { %241 = shalt.err (%p282_p2)  }
 0x11f   :  { %243 = vsyncmov [#allocation3 + $0x5] }
 0x122   :  { %s244_s3 = vpop.sfrf %243 }
 0x123   :  { %p283_p3 = scmp.ne.s32.totalorder %s244_s3, 0 }
 0x125   :  { %248 = shalt.err (%p283_p3)  }
 0x126   :  { %250 = vsyncmov [#allocation3 + $0x6] }
 0x129   :  { %s251_s7 = vpop.sfrf %250 }
 0x12a   :  { %p284_p4 = scmp.ne.s32.totalorder %s251_s7, 0 }
 0x12c   :  { %255 = shalt.err (%p284_p4)  }
 0x12d   :  { %257 = vsyncmov [#allocation3 + $0x7] }
 0x130   :  { %s258_s8 = vpop.sfrf %257 }
 0x131   :  { %p285_p5 = scmp.ne.s32.totalorder %s258_s8, 0 }
 0x133   :  { %262 = shalt.err (%p285_p5)  }

</bundles_post_ra>
